<compile_context>
chip_gen: v5e
topology: v5e:2x2
jax: 0.10.0
libtpu: 0.0.40
codegen_flags: <defaults>
</compile_context>

<pallas_src>
from functools import partial  # noqa: F401  (kept for easy extension)

import jax
import jax.numpy as jnp
import numpy as np
from jax.experimental import pallas as pl
from jax.experimental.pallas import tpu as pltpu

NUM_EMBED = 250  # nn.Embedding(250, num_pos_feats)


def _pos_kernel(col_ref, dep_ref, row_ref, out_ref):
    """Writes one h-tile of the batch-invariant position tensor (channels-last-flat).

    col_ref: (w*d, F)   col_embed rows, each repeated d times  (row iw*d+id -> col[iw])
    dep_ref: (w*d, F)   depth_embed rows tiled w times         (row iw*d+id -> dep[id])
    row_ref: (th, 1, F) row_embed rows for this h-tile
    out_ref: (th, w*d, 3F)
    """
    th, n, three_f = out_ref.shape
    f = three_f // 3

    # Direct, 128-aligned (for F=128) segment stores; no concatenate, no reshape.
    out_ref[:, :, 0:f] = jnp.broadcast_to(col_ref[...][None, :, :], (th, n, f))
    out_ref[:, :, f:2 * f] = jnp.broadcast_to(row_ref[...], (th, n, f))
    out_ref[:, :, 2 * f:3 * f] = jnp.broadcast_to(dep_ref[...][None, :, :], (th, n, f))


def _pick_tile_h(h, n, three_f, bytes_per_elem=4, vmem_budget=4 * 1024 * 1024):
    """Largest divisor of h whose (th, n, 3F) block fits the budget, preferring
    >=2 grid steps so a parallel grid axis can be sharded across TensorCores."""
    divisors = [t for t in range(1, h + 1) if h % t == 0]
    fitting = [t for t in divisors if t * n * three_f * bytes_per_elem <= vmem_budget]
    if not fitting:
        fitting = [1]
    cand = [t for t in fitting if h // t >= 2] or fitting
    return max(cand)


def position_embedding_learned(x, col_w, row_w, dep_w):
    """x: (B, C, h, w, d). Returns pos: (B, 3F, h, w, d) float32."""
    B = x.shape[0]
    h, w, d = x.shape[-3:]
    assert max(h, w, d) <= NUM_EMBED, "spatial extent exceeds embedding table"
    f = col_w.shape[1]
    n = w * d
    three_f = 3 * f

    # Tiny table preprocessing in XLA (a few KiB): slice to the used rows and
    # pre-flatten the (w, d) repeat/tile patterns so the kernel only performs
    # dense, aligned copies / broadcasts (no in-kernel gather/reshape/concat).
    col_wd = jnp.repeat(col_w[:w].astype(jnp.float32), d, axis=0)   # (w*d, F)
    dep_wd = jnp.tile(dep_w[:d].astype(jnp.float32), (w, 1))        # (w*d, F)
    row_h = row_w[:h].astype(jnp.float32).reshape(h, 1, f)          # (h, 1, F)

    th = _pick_tile_h(h, n, three_f)
    grid = (h // th,)

    pos_flat = pl.pallas_call(
        _pos_kernel,
        out_shape=jax.ShapeDtypeStruct((h, n, three_f), jnp.float32),
        grid=grid,
        in_specs=[
            pl.BlockSpec((n, f), lambda i: (0, 0)),          # col_wd (VMEM-resident)
            pl.BlockSpec((n, f), lambda i: (0, 0)),          # dep_wd (VMEM-resident)
            pl.BlockSpec((th, 1, f), lambda i: (i, 0, 0)),   # row rows for this tile
        ],
        out_specs=pl.BlockSpec((th, n, three_f), lambda i: (i, 0, 0)),
        compiler_params=pltpu.CompilerParams(
            dimension_semantics=("parallel",)),
    )(col_wd, dep_wd, row_h)

    # (h, w*d, 3F) -> (h, w, d, 3F) is a free contiguous reshape; the channel
    # permute + batch repeat fuse into a single XLA broadcast under jit.
    # Downstream consumers that accept channels-last / un-broadcast tensors
    # could skip this materialization entirely.
    pos = pos_flat.reshape(h, w, d, three_f)
    pos = jnp.transpose(pos, (3, 0, 1, 2))                    # (3F, h, w, d)
    return jnp.broadcast_to(pos[None], (B, three_f, h, w, d))


def _reference(x, col_w, row_w, dep_w):
    h, w, d = x.shape[-3:]
    f = col_w.shape[1]
    x_emb = col_w[:w]
    y_emb = row_w[:h]
    z_emb = dep_w[:d]
    bx = jnp.broadcast_to(x_emb[None, :, None, :], (h, w, d, f))
    by = jnp.broadcast_to(y_emb[:, None, None, :], (h, w, d, f))
    bz = jnp.broadcast_to(z_emb[None, None, :, :], (h, w, d, f))
    pos = jnp.concatenate([bx, by, bz], axis=-1)              # (h, w, d, 3F)
    pos = jnp.transpose(pos, (3, 0, 1, 2))[None]              # (1, 3F, h, w, d)
    return jnp.broadcast_to(pos, (x.shape[0],) + pos.shape[1:])


if __name__ == "__main__":
    key = jax.random.PRNGKey(0)
    k_x, k_col, k_row, k_dep = jax.random.split(key, 4)

    B, C, H, W, D = 2, 4, 8, 8, 4
    num_pos_feats = 128   # module default -> 3F = 384 (lane-dense, 3x128)

    x = jax.random.normal(k_x, (B, C, H, W, D), dtype=jnp.float32)

    # nn.init.uniform_ -> U[0, 1)
    col_w = jax.random.uniform(k_col, (NUM_EMBED, num_pos_feats), dtype=jnp.float32)
    row_w = jax.random.uniform(k_row, (NUM_EMBED, num_pos_feats), dtype=jnp.float32)
    dep_w = jax.random.uniform(k_dep, (NUM_EMBED, num_pos_feats), dtype=jnp.float32)

    pos_fn = jax.jit(position_embedding_learned)
    pos = jax.block_until_ready(pos_fn(x, col_w, row_w, dep_w))

    ref = jax.block_until_ready(_reference(x, col_w, row_w, dep_w))

    assert pos.shape == (B, 3 * num_pos_feats, H, W, D), pos.shape
    np.testing.assert_allclose(np.asarray(pos), np.asarray(ref), rtol=0, atol=0)

    print("KERNEL_OK")
</pallas_src>

<mosaic_0001>
module attributes {stable_mosaic.version = 11 : i64} {
  func.func @_pos_kernel(%arg0: i32, %arg1: memref<32x128xf32, #tpu.memory_space<vmem>>, %arg2: memref<32x128xf32, #tpu.memory_space<vmem>>, %arg3: memref<4x1x128xf32, #tpu.memory_space<vmem>>, %arg4: memref<4x32x384xf32, #tpu.memory_space<vmem>>) attributes {dimension_semantics = [#tpu.dimension_semantics<parallel>], iteration_bounds = array<i64: 2>, scalar_prefetch = 0 : i64, scratch_operands = 0 : i64, tpu.core_type = #tpu.core_type<tc>, window_params = [{pipeline_mode = #tpu.pipeline_mode<synchronous>, transform_indices = @transform_0, window_bounds = array<i64: 32, 128>}, {pipeline_mode = #tpu.pipeline_mode<synchronous>, transform_indices = @transform_1, window_bounds = array<i64: 32, 128>}, {transform_indices = @transform_2, window_bounds = array<i64: 4, 1, 128>}, {transform_indices = @transform_3, window_bounds = array<i64: 4, 32, 384>}]} {
    %c0 = arith.constant 0 : index
    %c0_0 = arith.constant 0 : index
    %0 = vector.load %arg1[%c0, %c0_0] : memref<32x128xf32, #tpu.memory_space<vmem>>, vector<32x128xf32>
    %1 = vector.shape_cast %0 : vector<32x128xf32> to vector<1x32x128xf32>
    %2 = vector.shape_cast %1 : vector<1x32x128xf32> to vector<1x32x128xf32>
    %3 = vector.broadcast %2 : vector<1x32x128xf32> to vector<4x32x128xf32>
    %c0_1 = arith.constant 0 : index
    %c0_2 = arith.constant 0 : index
    %c0_3 = arith.constant 0 : index
    %4 = vector.load %arg4[%c0_1, %c0_2, %c0_3] : memref<4x32x384xf32, #tpu.memory_space<vmem>>, vector<4x32x128xf32>
    tpu.vector_store %arg4[%c0_1, %c0_2, %c0_3], %3 {strides = array<i32>} : memref<4x32x384xf32, #tpu.memory_space<vmem>>, vector<4x32x128xf32>,
    %c0_4 = arith.constant 0 : index
    %c0_5 = arith.constant 0 : index
    %c0_6 = arith.constant 0 : index
    %5 = vector.load %arg3[%c0_4, %c0_5, %c0_6] : memref<4x1x128xf32, #tpu.memory_space<vmem>>, vector<4x1x128xf32>
    %6 = vector.shape_cast %5 : vector<4x1x128xf32> to vector<4x1x128xf32>
    %7 = vector.broadcast %6 : vector<4x1x128xf32> to vector<4x32x128xf32>
    %c0_7 = arith.constant 0 : index
    %c0_8 = arith.constant 0 : index
    %c128 = arith.constant 128 : index
    %8 = vector.load %arg4[%c0_7, %c0_8, %c128] : memref<4x32x384xf32, #tpu.memory_space<vmem>>, vector<4x32x128xf32>
    tpu.vector_store %arg4[%c0_7, %c0_8, %c128], %7 {strides = array<i32>} : memref<4x32x384xf32, #tpu.memory_space<vmem>>, vector<4x32x128xf32>,
    %c0_9 = arith.constant 0 : index
    %c0_10 = arith.constant 0 : index
    %9 = vector.load %arg2[%c0_9, %c0_10] : memref<32x128xf32, #tpu.memory_space<vmem>>, vector<32x128xf32>
    %10 = vector.shape_cast %9 : vector<32x128xf32> to vector<1x32x128xf32>
    %11 = vector.shape_cast %10 : vector<1x32x128xf32> to vector<1x32x128xf32>
    %12 = vector.broadcast %11 : vector<1x32x128xf32> to vector<4x32x128xf32>
    %c0_11 = arith.constant 0 : index
    %c0_12 = arith.constant 0 : index
    %c256 = arith.constant 256 : index
    %13 = vector.load %arg4[%c0_11, %c0_12, %c256] : memref<4x32x384xf32, #tpu.memory_space<vmem>>, vector<4x32x128xf32>
    tpu.vector_store %arg4[%c0_11, %c0_12, %c256], %12 {strides = array<i32>} : memref<4x32x384xf32, #tpu.memory_space<vmem>>, vector<4x32x128xf32>,
    return
  }
  func.func @transform_0(%arg0: i32) -> (i32, i32) {
    %c0_i32 = arith.constant 0 : i32
    %c0_i32_0 = arith.constant 0 : i32
    %c0_i32_1 = arith.constant 0 : i32
    return %c0_i32, %c0_i32_0 : i32, i32
  }
  func.func @transform_1(%arg0: i32) -> (i32, i32) {
    %c0_i32 = arith.constant 0 : i32
    %c0_i32_0 = arith.constant 0 : i32
    %c0_i32_1 = arith.constant 0 : i32
    return %c0_i32, %c0_i32_0 : i32, i32
  }
  func.func @transform_2(%arg0: i32) -> (i32, i32, i32) {
    %c0_i32 = arith.constant 0 : i32
    %c0_i32_0 = arith.constant 0 : i32
    %c0_i32_1 = arith.constant 0 : i32
    return %arg0, %c0_i32, %c0_i32_0 : i32, i32, i32
  }
  func.func @transform_3(%arg0: i32) -> (i32, i32, i32) {
    %c0_i32 = arith.constant 0 : i32
    %c0_i32_0 = arith.constant 0 : i32
    %c0_i32_1 = arith.constant 0 : i32
    return %arg0, %c0_i32, %c0_i32_0 : i32, i32, i32
  }
}

</mosaic_0001>

<bundles_post_ra>
// kernel: position_embedding_learned.1
= control target key start
LH: loop header
LB: loop body
LE: loop exit
PB: predicated region body
PF: predicated region fallthrough
CT: control target
= control target key end

     0   :  { %s351_s12 = smov 0   ;;  %s448_s0 = inlined_call_operand.vmem [shape: f32[32,128], index: 0, kind: input, shape index: {}]   ;;  %s449_s1 = inlined_call_operand.vmem [shape: f32[32,128], index: 1, kind: input, shape index: {}]   ;;  %s450_s2 = inlined_call_operand.vmem [shape: f32[8,1,128], index: 2, kind: input, shape index: {}]   ;;  %s451_s3 = inlined_call_operand.vmem [shape: f32[8,32,384], index: 3, kind: output, shape index: {}]  }
   0x1 LB: > { %s300_s13 = sadd.s32 4294967295, %s329_s12   ;;  %p304_p0 = scmp.ge.s32.totalorder %s329_s12, 1  ;;  %s329_s12 = sphi %s351_s12, %s13_s12  }
   0x2   : > { %p137_p1 = scmp.lt.s32.totalorder %s329_s12, 3 }
   0x4   : > { %p138_p2 = pnand %p304_p0, %p137_p1 }
   0x5   : > { %s305_s14 = sshll.u32 (!%p138_p2), %s300_s13, 2 }
   0x6   : > { %141 = sbr.rel (%p138_p2) target bundleno = 63 (0x3f), region = 32  ;;  %p162_p3 = scmp.lt.s32.totalorder (!%p138_p2), %s305_s14, 7 }
   0xb   : > { %s453_s14 = smov (!%p162_p3, %s305_s14), 7  ;;  %v173_v0 = vld [vmem:[%s448_s0] sm:$0xff]  ;;  %v174_v1 = vld [vmem:[%s448_s0 + $0x8] sm:$0xff]  ;;  %v175_v2 = vld [vmem:[%s448_s0 + $0x10] sm:$0xff] }
   0xc   : > { %s310_s15 = smul.u32 96, %s453_s14  ;;  %s365_s20 = scalar_lea.vmem %s450_s2, %s453_s14  ;;  %v176_v3 = vld [vmem:[%s448_s0 + $0x18] sm:$0xff]  ;;  %v225_v5 = vld [vmem:[%s449_s1] sm:$0xff]  ;;  %v226_v6 = vld [vmem:[%s449_s1 + $0x8] sm:$0xff] }
   0xd   : > { %v319_v4 = vld [vmem:[%s365_s20] ss:$0 sm:$0xff]  ;;  %v227_v7 = vld [vmem:[%s449_s1 + $0x10] sm:$0xff]  ;;  %v228_v8 = vld [vmem:[%s449_s1 + $0x18] sm:$0xff] }
   0xe   : > { %s370_s23 = scalar_lea.vmem %s451_s3, %s310_s15  ;;  %v320_v9 = vld [vmem:[%s365_s20 + $0x1] ss:$0 sm:$0xff]  ;;  %v321_v10 = vld [vmem:[%s365_s20 + $0x2] ss:$0 sm:$0xff]  ;;  %v322_v11 = vld [vmem:[%s365_s20 + $0x3] ss:$0 sm:$0xff] }
   0xf   : > { %177 = vst [vmem:[%s370_s23] sm:$0xff] %v173_v0 }
  0x10   : > { %181 = vst [vmem:[%s370_s23 + $0x60] sm:$0xff] %v173_v0 }
  0x11   : > { %178 = vst [vmem:[%s370_s23 + $0x18] sm:$0xff] %v174_v1 }
  0x12   : > { %182 = vst [vmem:[%s370_s23 + $0x78] sm:$0xff] %v174_v1 }
  0x13   : > { %185 = vst [vmem:[%s370_s23 + $0xc0] sm:$0xff] %v173_v0 }
  0x14   : > { %179 = vst [vmem:[%s370_s23 + $0x30] sm:$0xff] %v175_v2 }
  0x15   : > { %183 = vst [vmem:[%s370_s23 + $0x90] sm:$0xff] %v175_v2 }
  0x16   : > { %186 = vst [vmem:[%s370_s23 + $0xd8] sm:$0xff] %v174_v1 }
  0x17   : > { %189 = vst [vmem:[%s370_s23 + $0x120] sm:$0xff] %v173_v0 }
  0x18   : > { %180 = vst [vmem:[%s370_s23 + $0x48] sm:$0xff] %v176_v3 }
  0x19   : > { %184 = vst [vmem:[%s370_s23 + $0xa8] sm:$0xff] %v176_v3 }
  0x1a   : > { %187 = vst [vmem:[%s370_s23 + $0xf0] sm:$0xff] %v175_v2 }
  0x1b   : > { %190 = vst [vmem:[%s370_s23 + $0x138] sm:$0xff] %v174_v1 }
  0x1c   : > { %209 = vst [vmem:[%s370_s23 + $0x8] sm:$0xff] %v319_v4 }
  0x1d   : > { %188 = vst [vmem:[%s370_s23 + $0x108] sm:$0xff] %v176_v3 }
  0x1e   : > { %191 = vst [vmem:[%s370_s23 + $0x150] sm:$0xff] %v175_v2 }
  0x1f   : > { %210 = vst [vmem:[%s370_s23 + $0x20] sm:$0xff] %v319_v4 }
  0x20   : > { %211 = vst [vmem:[%s370_s23 + $0x38] sm:$0xff] %v319_v4 }
  0x21   : > { %212 = vst [vmem:[%s370_s23 + $0x50] sm:$0xff] %v319_v4 }
  0x22   : > { %192 = vst [vmem:[%s370_s23 + $0x168] sm:$0xff] %v176_v3 }
  0x23   : > { %229 = vst [vmem:[%s370_s23 + $0x10] sm:$0xff] %v225_v5 }
  0x24   : > { %233 = vst [vmem:[%s370_s23 + $0x70] sm:$0xff] %v225_v5 }
  0x25   : > { %230 = vst [vmem:[%s370_s23 + $0x28] sm:$0xff] %v226_v6 }
  0x26   : > { %234 = vst [vmem:[%s370_s23 + $0x88] sm:$0xff] %v226_v6 }
  0x27   : > { %237 = vst [vmem:[%s370_s23 + $0xd0] sm:$0xff] %v225_v5 }
  0x28   : > { %231 = vst [vmem:[%s370_s23 + $0x40] sm:$0xff] %v227_v7 }
  0x29   : > { %235 = vst [vmem:[%s370_s23 + $0xa0] sm:$0xff] %v227_v7 }
  0x2a   : > { %238 = vst [vmem:[%s370_s23 + $0xe8] sm:$0xff] %v226_v6 }
  0x2b   : > { %241 = vst [vmem:[%s370_s23 + $0x130] sm:$0xff] %v225_v5 }
  0x2c   : > { %232 = vst [vmem:[%s370_s23 + $0x58] sm:$0xff] %v228_v8 }
  0x2d   : > { %236 = vst [vmem:[%s370_s23 + $0xb8] sm:$0xff] %v228_v8 }
  0x2e   : > { %239 = vst [vmem:[%s370_s23 + $0x100] sm:$0xff] %v227_v7 }
  0x2f   : > { %242 = vst [vmem:[%s370_s23 + $0x148] sm:$0xff] %v226_v6 }
  0x30   : > { %240 = vst [vmem:[%s370_s23 + $0x118] sm:$0xff] %v228_v8 }
  0x31   : > { %243 = vst [vmem:[%s370_s23 + $0x160] sm:$0xff] %v227_v7 }
  0x32   : > { %244 = vst [vmem:[%s370_s23 + $0x178] sm:$0xff] %v228_v8 }
  0x33   : > { %213 = vst [vmem:[%s370_s23 + $0x68] sm:$0xff] %v320_v9 }
  0x34   : > { %214 = vst [vmem:[%s370_s23 + $0x80] sm:$0xff] %v320_v9 }
  0x35   : > { %215 = vst [vmem:[%s370_s23 + $0x98] sm:$0xff] %v320_v9 }
  0x36   : > { %216 = vst [vmem:[%s370_s23 + $0xb0] sm:$0xff] %v320_v9 }
  0x37   : > { %217 = vst [vmem:[%s370_s23 + $0xc8] sm:$0xff] %v321_v10 }
  0x38   : > { %218 = vst [vmem:[%s370_s23 + $0xe0] sm:$0xff] %v321_v10 }
  0x39   : > { %219 = vst [vmem:[%s370_s23 + $0xf8] sm:$0xff] %v321_v10 }
  0x3a   : > { %220 = vst [vmem:[%s370_s23 + $0x110] sm:$0xff] %v321_v10 }
  0x3b   : > { %221 = vst [vmem:[%s370_s23 + $0x128] sm:$0xff] %v322_v11 }
  0x3c   : > { %222 = vst [vmem:[%s370_s23 + $0x140] sm:$0xff] %v322_v11 }
  0x3d   : > { %223 = vst [vmem:[%s370_s23 + $0x158] sm:$0xff] %v322_v11 }
  0x3e   : > { %224 = vst [vmem:[%s370_s23 + $0x170] sm:$0xff] %v322_v11 }
  0x3f PF: > { %s13_s12 = sadd.s32 1, %s329_s12  }
  0x40   : > { %p10_p4 = scmp.ge.s32.totalorder %s13_s12, 4  }
  0x42   :  { %12 = sbr.rel (!%p10_p4) target bundleno = 1 (0x1), region = 62 }

</bundles_post_ra>
